<compile_context>
chip_gen: v7x
topology: tpu7x:2x2x1
jax: 0.10.0
libtpu: 0.0.40
codegen_flags: <defaults>
</compile_context>

<pallas_src>
import functools

import jax
import jax.numpy as jnp
from jax.experimental import pallas as pl
from jax.experimental.pallas import tpu as pltpu

NORM = 0.75           # deterministic "norm" constructor argument
LANE = 128            # TPU lane width
SUBLANE = 8
MAX_TILE_ROWS = 2048  # 2048 x 128 f32 = 1 MiB per input block


def _round_up(a, b):
    return -(-a // b) * b


def _round_down(a, b):
    return a // b * b


def _num_tensorcores():
    """Chips whose TensorCores are driven by a single Pallas program (megacore split)."""
    try:
        kind = jax.devices()[0].device_kind.lower()
    except Exception:
        return 1
    return 2 if any(t in kind for t in ("v4", "v5p", "v5 p", "7")) else 1


def _bce_with_logits(x, y):
    # numerically stable BCE-with-logits (reduction handled by the caller)
    return jnp.maximum(x, 0.0) - x * y + jnp.log1p(jnp.exp(-jnp.abs(x)))


def _vgae_loss_kernel(x_ref, gt_ref, mu_ref, ls_ref, out_ref, *, c_bce, c_kl):
    step = pl.program_id(1)          # "arbitrary" axis: accumulator block is resident across it

    @pl.when(step == 0)
    def _init():
        out_ref[...] = jnp.zeros_like(out_ref)

    # ---- reconstruction term: this stream contains NO padding, so no mask is needed ----
    x = x_ref[...].astype(jnp.float32)
    y = gt_ref[...].astype(jnp.float32)
    bce = _bce_with_logits(x, y)
    bce_p = jnp.sum(bce.reshape(-1, SUBLANE, LANE), axis=0)         # (8,128), VALU-only partial

    # ---- KL term: 1 + 2*logstd - mu^2 - exp(2*logstd) ----
    # (zero padding contributes 1 + 0 - 0 - exp(0) = 0 exactly -> no mask needed)
    mu = mu_ref[...].astype(jnp.float32)
    two_ls = 2.0 * ls_ref[...].astype(jnp.float32)
    kl = 1.0 + two_ls - mu * mu - jnp.exp(two_ls)
    kl_p = jnp.sum(kl.reshape(-1, SUBLANE, LANE), axis=0)           # (8,128), VALU-only partial

    out_ref[...] = out_ref[...] + (c_bce * bce_p + c_kl * kl_p)[None]


def vgae_loss(x, ground_truth, mu, logstd, norm=NORM, max_tile_rows=MAX_TILE_ROWS):
    """Pallas TPU implementation of VGAELossWrapper.forward. Returns a scalar f32."""
    n_nodes = x.shape[0]
    n_x = x.size               # N * D   reconstruction logits
    n_z = mu.size              # N * L   latent

    # loss = norm * sum(bce)/(N*D)  +  (0.5/N) * (-0.5/N) * sum(kl_terms)
    c_bce = float(norm) / float(n_x)
    c_kl = -0.25 / (float(n_nodes) ** 2)

    x_flat = x.reshape(-1)
    gt_flat = ground_truth.reshape(-1)

    rows_x = n_x // LANE
    num_cores = _num_tensorcores()
    if rows_x < SUBLANE * num_cores:
        num_cores = 1
    if rows_x < SUBLANE:
        # Tiny input: a pallas_call launch costs more than the whole computation.
        bce = _bce_with_logits(x_flat.astype(jnp.float32), gt_flat.astype(jnp.float32))
        mu_f = mu.astype(jnp.float32)
        ls_f = logstd.astype(jnp.float32)
        kl = 1.0 + 2.0 * ls_f - mu_f * mu_f - jnp.exp(2.0 * ls_f)
        return c_bce * jnp.sum(bce) + c_kl * jnp.sum(kl)

    # ---- tiling of the x / ground_truth stream: exact, un-padded prefix coverage ----
    max_tile_rows = max(SUBLANE, int(max_tile_rows))
    tiles_per_core = max(1, -(-rows_x // (max_tile_rows * num_cores)))
    tiles_per_core = max(1, min(tiles_per_core, rows_x // (SUBLANE * num_cores)))
    tiles_total = num_cores * tiles_per_core            # multiple of num_cores: balanced split
    tile_rows_x = _round_down(rows_x // tiles_total, SUBLANE)
    covered_rows_x = tiles_total * tile_rows_x
    covered_x = covered_rows_x * LANE

    # zero-copy when the stream is already tile-aligned; otherwise a single prefix slice
    x_main = x_flat[:covered_x].reshape(covered_rows_x, LANE)
    gt_main = gt_flat[:covered_x].reshape(covered_rows_x, LANE)

    # ---- tiling of the (much smaller) mu / logstd stream: right-sized + zero-padded ----
    rows_z = -(-n_z // LANE)
    tile_rows_z = max(SUBLANE, _round_up(-(-rows_z // tiles_total), SUBLANE))
    padded_rows_z = tiles_total * tile_rows_z
    n_z_padded = padded_rows_z * LANE

    def pad_z(a):
        flat = a.reshape(-1)
        flat = jnp.pad(flat, (0, n_z_padded - n_z))
        return flat.reshape(padded_rows_z, LANE)

    mu_p, ls_p = pad_z(mu), pad_z(logstd)

    kernel = functools.partial(_vgae_loss_kernel, c_bce=c_bce, c_kl=c_kl)

    def index_map(c, i):
        return (c * tiles_per_core + i, 0)

    x_spec = pl.BlockSpec((tile_rows_x, LANE), index_map)
    z_spec = pl.BlockSpec((tile_rows_z, LANE), index_map)

    bytes_in = (x_main.size * x_main.dtype.itemsize
                + gt_main.size * gt_main.dtype.itemsize
                + mu_p.size * mu_p.dtype.itemsize
                + ls_p.size * ls_p.dtype.itemsize)
    cost = pl.CostEstimate(
        flops=6 * covered_x + 5 * n_z_padded,
        transcendentals=2 * covered_x + n_z_padded,   # exp + log1p per BCE elem, exp per KL elem
        bytes_accessed=bytes_in + num_cores * SUBLANE * LANE * 4,
    )

    out = pl.pallas_call(
        kernel,
        out_shape=jax.ShapeDtypeStruct((num_cores, SUBLANE, LANE), jnp.float32),
        grid_spec=pltpu.PrefetchScalarGridSpec(
            num_scalar_prefetch=0,
            grid=(num_cores, tiles_per_core),
            in_specs=[x_spec, x_spec, z_spec, z_spec],
            out_specs=pl.BlockSpec((1, SUBLANE, LANE), lambda c, i: (c, 0, 0)),
        ),
        compiler_params=pltpu.CompilerParams(
            dimension_semantics=("parallel", "arbitrary")),
        cost_estimate=cost,
    )(x_main, gt_main, mu_p, ls_p)

    # single cross-lane/sublane reduction of the per-core (8,128) partials, once, in the wrapper
    total = jnp.sum(out, dtype=jnp.float32)

    # sub-tile remainder of the BCE stream (< one tile of elements): plain jnp epilogue
    if covered_x < n_x:
        x_t = x_flat[covered_x:].astype(jnp.float32)
        y_t = gt_flat[covered_x:].astype(jnp.float32)
        total = total + c_bce * jnp.sum(_bce_with_logits(x_t, y_t))

    return total


def _reference(x, ground_truth, mu, logstd, norm=NORM):
    # pure-JAX reference (mirrors torch BCEWithLogitsLoss + kl_loss)
    bce = jnp.mean(
        jnp.maximum(x, 0.0) - x * ground_truth + jnp.log1p(jnp.exp(-jnp.abs(x)))
    )
    kl = -0.5 * jnp.mean(
        jnp.sum(1.0 + 2.0 * logstd - mu ** 2 - jnp.exp(logstd) ** 2, axis=1)
    )
    return norm * bce + 0.5 / x.shape[0] * kl


if __name__ == "__main__":
    key = jax.random.PRNGKey(0)
    k1, k2, k3, k4 = jax.random.split(key, 4)

    # N nodes, D reconstruction logits per node, L latent dims.
    # N*D = 12000 is not a multiple of 128, so the tile-aligned kernel path AND the sub-tile
    # jnp epilogue are exercised; max_tile_rows=32 forces a multi-step grid so the pl.when
    # accumulator path runs; the latent stream exercises the right-sized z BlockSpec and the
    # KL zero-padding identity.
    N, D, L = 200, 60, 30
    x = jax.random.normal(k1, (N, D), dtype=jnp.float32)               # batch.x (logits)
    ground_truth = (jax.random.uniform(k2, (N, D)) > 0.5).astype(jnp.float32)
    mu = jax.random.normal(k3, (N, L), dtype=jnp.float32)              # batch.mu
    logstd = 0.1 * jax.random.normal(k4, (N, L), dtype=jnp.float32)    # batch.logstd

    loss_fn = jax.jit(functools.partial(vgae_loss, max_tile_rows=32))
    out = loss_fn(x, ground_truth, mu, logstd)
    jax.block_until_ready(out)

    ref = _reference(x, ground_truth, mu, logstd)
    assert jnp.allclose(out, ref, rtol=1e-5, atol=1e-5), (out, ref)

    print("KERNEL_OK")
</pallas_src>

<mosaic_0001>
module attributes {stable_mosaic.version = 11 : i64} {
  func.func @_vgae_loss_kernel(%arg0: i32, %arg1: i32, %arg2: memref<24x128xf32, #tpu.memory_space<vmem>>, %arg3: memref<24x128xf32, #tpu.memory_space<vmem>>, %arg4: memref<16x128xf32, #tpu.memory_space<vmem>>, %arg5: memref<16x128xf32, #tpu.memory_space<vmem>>, %arg6: memref<1x8x128xf32, #tpu.memory_space<vmem>>) attributes {dimension_semantics = [#tpu.dimension_semantics<parallel>, #tpu.dimension_semantics<arbitrary>], iteration_bounds = array<i64: 1, 3>, scalar_prefetch = 0 : i64, scratch_operands = 0 : i64, tpu.core_type = #tpu.core_type<tc>, window_params = [{transform_indices = @transform_0, window_bounds = array<i64: 24, 128>}, {transform_indices = @transform_1, window_bounds = array<i64: 24, 128>}, {transform_indices = @transform_2, window_bounds = array<i64: 16, 128>}, {transform_indices = @transform_3, window_bounds = array<i64: 16, 128>}, {transform_indices = @transform_4, window_bounds = array<i64: 1, 8, 128>}]} {
    %c0_i32 = arith.constant 0 : i32
    %0 = arith.cmpi eq, %arg1, %c0_i32 : i32
    %1 = arith.extui %0 : i1 to i32
    %c0_i32_0 = arith.constant 0 : i32
    %2 = arith.cmpi ne, %1, %c0_i32_0 : i32
    scf.if %2 {
      %cst_21 = arith.constant 0.000000e+00 : f32
      %38 = vector.broadcast %cst_21 : f32 to vector<1x8x128xf32>
      %c0_22 = arith.constant 0 : index
      %c0_23 = arith.constant 0 : index
      %c0_24 = arith.constant 0 : index
      %39 = vector.load %arg6[%c0_22, %c0_23, %c0_24] : memref<1x8x128xf32, #tpu.memory_space<vmem>>, vector<1x8x128xf32>
      tpu.vector_store %arg6[%c0_22, %c0_23, %c0_24], %38 {strides = array<i32>} : memref<1x8x128xf32, #tpu.memory_space<vmem>>, vector<1x8x128xf32>,
    } else {
    }
    %c0 = arith.constant 0 : index
    %c0_1 = arith.constant 0 : index
    %3 = vector.load %arg2[%c0, %c0_1] : memref<24x128xf32, #tpu.memory_space<vmem>>, vector<24x128xf32>
    %c0_2 = arith.constant 0 : index
    %c0_3 = arith.constant 0 : index
    %4 = vector.load %arg3[%c0_2, %c0_3] : memref<24x128xf32, #tpu.memory_space<vmem>>, vector<24x128xf32>
    %cst = arith.constant 0.000000e+00 : f32
    %5 = vector.broadcast %cst : f32 to vector<24x128xf32>
    %6 = arith.maximumf %3, %5 : vector<24x128xf32>
    %7 = arith.mulf %3, %4 : vector<24x128xf32>
    %8 = arith.subf %6, %7 : vector<24x128xf32>
    %9 = math.absf %3 : vector<24x128xf32>
    %cst_4 = arith.constant 0.000000e+00 : f32
    %10 = vector.broadcast %cst_4 : f32 to vector<24x128xf32>
    %11 = arith.subf %10, %9 : vector<24x128xf32>
    %12 = math.exp %11 : vector<24x128xf32>
    %13 = math.log1p %12 : vector<24x128xf32>
    %14 = arith.addf %8, %13 : vector<24x128xf32>
    %15 = vector.shape_cast %14 : vector<24x128xf32> to vector<3x8x128xf32>
    %cst_5 = arith.constant dense<0.000000e+00> : vector<8x128xf32>
    %16 = vector.multi_reduction <add>, %15, %cst_5 [0] : vector<3x8x128xf32> to vector<8x128xf32>
    %c0_6 = arith.constant 0 : index
    %c0_7 = arith.constant 0 : index
    %17 = vector.load %arg4[%c0_6, %c0_7] : memref<16x128xf32, #tpu.memory_space<vmem>>, vector<16x128xf32>
    %c0_8 = arith.constant 0 : index
    %c0_9 = arith.constant 0 : index
    %18 = vector.load %arg5[%c0_8, %c0_9] : memref<16x128xf32, #tpu.memory_space<vmem>>, vector<16x128xf32>
    %cst_10 = arith.constant 2.000000e+00 : f32
    %19 = vector.broadcast %cst_10 : f32 to vector<16x128xf32>
    %20 = arith.mulf %19, %18 : vector<16x128xf32>
    %cst_11 = arith.constant 1.000000e+00 : f32
    %21 = vector.broadcast %cst_11 : f32 to vector<16x128xf32>
    %22 = arith.addf %21, %20 : vector<16x128xf32>
    %23 = arith.mulf %17, %17 : vector<16x128xf32>
    %24 = arith.subf %22, %23 : vector<16x128xf32>
    %25 = math.exp %20 : vector<16x128xf32>
    %26 = arith.subf %24, %25 : vector<16x128xf32>
    %27 = vector.shape_cast %26 : vector<16x128xf32> to vector<2x8x128xf32>
    %cst_12 = arith.constant dense<0.000000e+00> : vector<8x128xf32>
    %28 = vector.multi_reduction <add>, %27, %cst_12 [0] : vector<2x8x128xf32> to vector<8x128xf32>
    %c0_13 = arith.constant 0 : index
    %c0_14 = arith.constant 0 : index
    %c0_15 = arith.constant 0 : index
    %29 = vector.load %arg6[%c0_13, %c0_14, %c0_15] : memref<1x8x128xf32, #tpu.memory_space<vmem>>, vector<1x8x128xf32>
    %cst_16 = arith.constant 6.250000e-05 : f32
    %30 = vector.broadcast %cst_16 : f32 to vector<8x128xf32>
    %31 = arith.mulf %30, %16 : vector<8x128xf32>
    %cst_17 = arith.constant -6.250000e-06 : f32
    %32 = vector.broadcast %cst_17 : f32 to vector<8x128xf32>
    %33 = arith.mulf %32, %28 : vector<8x128xf32>
    %34 = arith.addf %31, %33 : vector<8x128xf32>
    %35 = vector.shape_cast %34 : vector<8x128xf32> to vector<1x8x128xf32>
    %36 = arith.addf %29, %35 : vector<1x8x128xf32>
    %c0_18 = arith.constant 0 : index
    %c0_19 = arith.constant 0 : index
    %c0_20 = arith.constant 0 : index
    %37 = vector.load %arg6[%c0_18, %c0_19, %c0_20] : memref<1x8x128xf32, #tpu.memory_space<vmem>>, vector<1x8x128xf32>
    tpu.vector_store %arg6[%c0_18, %c0_19, %c0_20], %36 {strides = array<i32>} : memref<1x8x128xf32, #tpu.memory_space<vmem>>, vector<1x8x128xf32>,
    return
  }
  func.func @transform_0(%arg0: i32, %arg1: i32) -> (i32, i32) {
    %c3_i32 = arith.constant 3 : i32
    %0 = arith.muli %arg0, %c3_i32 : i32
    %1 = arith.addi %0, %arg1 : i32
    %c0_i32 = arith.constant 0 : i32
    %c0_i32_0 = arith.constant 0 : i32
    return %1, %c0_i32 : i32, i32
  }
  func.func @transform_1(%arg0: i32, %arg1: i32) -> (i32, i32) {
    %c3_i32 = arith.constant 3 : i32
    %0 = arith.muli %arg0, %c3_i32 : i32
    %1 = arith.addi %0, %arg1 : i32
    %c0_i32 = arith.constant 0 : i32
    %c0_i32_0 = arith.constant 0 : i32
    return %1, %c0_i32 : i32, i32
  }
  func.func @transform_2(%arg0: i32, %arg1: i32) -> (i32, i32) {
    %c3_i32 = arith.constant 3 : i32
    %0 = arith.muli %arg0, %c3_i32 : i32
    %1 = arith.addi %0, %arg1 : i32
    %c0_i32 = arith.constant 0 : i32
    %c0_i32_0 = arith.constant 0 : i32
    return %1, %c0_i32 : i32, i32
  }
  func.func @transform_3(%arg0: i32, %arg1: i32) -> (i32, i32) {
    %c3_i32 = arith.constant 3 : i32
    %0 = arith.muli %arg0, %c3_i32 : i32
    %1 = arith.addi %0, %arg1 : i32
    %c0_i32 = arith.constant 0 : i32
    %c0_i32_0 = arith.constant 0 : i32
    return %1, %c0_i32 : i32, i32
  }
  func.func @transform_4(%arg0: i32, %arg1: i32) -> (i32, i32, i32) {
    %c0_i32 = arith.constant 0 : i32
    %c0_i32_0 = arith.constant 0 : i32
    %c0_i32_1 = arith.constant 0 : i32
    return %arg0, %c0_i32, %c0_i32_0 : i32, i32, i32
  }
}

</mosaic_0001>

<bundles_post_ra>
// kernel: vgae_loss.1
= control target key start
LH: loop header
LB: loop body
LE: loop exit
PB: predicated region body
PF: predicated region fallthrough
CT: control target
= control target key end

     0   :  { %s621_s15 = smov 0   ;;  %s623_s16 = smov 0   ;;  %s688_s0 = inlined_call_operand.vmem [shape: f32[72,128], index: 0, kind: input, shape index: {}]   ;;  %s689_s1 = inlined_call_operand.vmem [shape: f32[72,128], index: 1, kind: input, shape index: {}]   ;;  %s690_s2 = inlined_call_operand.vmem [shape: f32[48,128], index: 2, kind: input, shape index: {}]   ;;  %s691_s3 = inlined_call_operand.vmem [shape: f32[48,128], index: 3, kind: input, shape index: {}]   ;;  %s692_s4 = inlined_call_operand.vmem [shape: f32[1,8,128], index: 4, kind: output, shape index: {}]  }
   0x1   :  { %s625_s17 = smov 0  }
   0x2 LB: > { %s23_s18 = sadd.s32 1, %s589_s16  ;;  %p519_p0 = scmp.ge.s32.totalorder %s593_s17, 1  ;;  %s593_s17 = sphi %s625_s17, %s14_s17   ;;  %s589_s16 = sphi %s623_s16, %s694_s16   ;;  %s585_s15 = sphi %s621_s15, %s693_s15  }
   0x3   : > { %p24_p1 = scmp.ge.s32.totalorder %s23_s18, 3  ;;  %p240_p2 = scmp.lt.s32.totalorder %s593_s17, 4 }
   0x5   : > { %s696_s18 = smov (%p24_p1, %s23_s18), 0  ;;  %p241_p3 = pnand %p519_p0, %p240_p2 }
   0x6   : > { %s290_s19 = smul.u32 (!%p241_p3), 3, %s585_s15  ;;  %s522_s20 = sshll.u32 (!%p241_p3), %s585_s15, 1 }
   0x7   : > { %244 = sbr.rel (%p241_p3) target bundleno = 73 (0x49), region = 36  ;;  %p311_p4 = scmp.lt.s32.totalorder (!%p241_p3), %s522_s20, 5 }
   0x8   : > { %p291_p5 = scmp.lt.s32.totalorder (!%p241_p3), %s290_s19, 8  ;;  %p526_p6 = scmp.ne.s32.totalorder (!%p241_p3), %s585_s15, 0 }
   0xe   : > { %s698_s20 = smov (!%p311_p4, %s522_s20), 5  ;;  %s700_s19 = smov (!%p291_p5, %s290_s19), 8 }
   0xf   : > { %s523_s21 = sshll.u32 %s698_s20, 3  ;;  %s520_s22 = sshll.u32 %s700_s19, 3  ;;  %v595_v0 = vmov (!%p526_p6), 0.0  }
  0x10   : > { %s642_s25 = scalar_lea.vmem %s690_s2, %s523_s21  ;;  %s294_s28 = scalar_lea.vmem %s688_s0, %s520_s22  ;;  %336 = vst [vmem:[%s692_s4] sm:$0xff] (!%p526_p6), %v595_v0 }
  0x11   : > { %s650_s5 = scalar_lea.vmem %s689_s1, %s520_s22  ;;  %s324_s8 = scalar_lea.vmem %s691_s3, %s523_s21 }
  0x12   : > { %335 = sbr.rel (%p526_p6) target bundleno = 25 (0x19), region = 40 }
  0x19 PF: > { %v337_v1 = vld [vmem:[%s294_s28] sm:$0xff]  ;;  %v658_v2 = vld [vmem:[%s294_s28 + $0x8] sm:$0xff]  ;;  %v660_v3 = vld [vmem:[%s294_s28 + $0x10] sm:$0xff] }
  0x1a   : > { %v352_v4 = vand.u32 2147483647, %v337_v1  ;;  %v353_v5 = vand.u32 2147483647, %v658_v2  ;;  %v354_v6 = vand.u32 2147483647, %v660_v3 }
  0x1b   : > { %v398_v13 = vld [vmem:[%s324_s8] sm:$0xff]  ;;  %v399_v14 = vld [vmem:[%s324_s8 + $0x8] sm:$0xff]  ;;  %v342_v36 = vld [vmem:[%s650_s5 + $0x10] sm:$0xff]  ;;  %v343_v37 = vmax.f32 %v337_v1, 0.0  ;;  %v344_v38 = vmax.f32 %v658_v2, 0.0  ;;  %v345_v50 = vmax.f32 %v660_v3, 0.0 }
  0x1c   : > { %v355_v7 = vsub.f32 0.0, %v352_v4  ;;  %v356_v8 = vsub.f32 0.0, %v353_v5  ;;  %v357_v9 = vsub.f32 0.0, %v354_v6  ;;  %v400_v15 = vmul.f32 2.0, %v398_v13  ;;  %v396_v24 = vld [vmem:[%s642_s25] sm:$0xff]  ;;  %v397_v26 = vld [vmem:[%s642_s25 + $0x8] sm:$0xff] }
  0x1d   : > { %v401_v16 = vmul.f32 2.0, %v399_v14  ;;  %v340_v28 = vld [vmem:[%s650_s5] sm:$0xff]  ;;  %v404_v30 = vmul.f32 %v396_v24, %v396_v24  ;;  %v341_v31 = vld [vmem:[%s650_s5 + $0x8] sm:$0xff]  ;;  %v405_v35 = vmul.f32 %v397_v26, %v397_v26  ;;  %v348_v51 = vmul.f32 %v342_v36, %v660_v3 }
  0x1e   : > { %v358_v10 = vmul.f32 1.442695, %v355_v7  ;;  %v360_v11 = vmul.f32 1.442695, %v356_v8  ;;  %v362_v12 = vmul.f32 1.442695, %v357_v9  ;;  %v346_v39 = vmul.f32 %v340_v28, %v337_v1 }
  0x1f   : > { %v408_v17 = vmul.f32 1.442695, %v400_v15  ;;  %v410_v18 = vmul.f32 1.442695, %v401_v16  ;;  %v402_v33 = vadd.f32 1.0, %v400_v15  ;;  %v403_v34 = vadd.f32 1.0, %v401_v16 }
  0x20   : > { %555 = vpow2.f32 %v358_v10  ;;  %v347_v41 = vmul.f32 %v341_v31, %v658_v2  ;;  %v349_v53 = vsub.f32 %v343_v37, %v346_v39  ;;  %v351_v0 = vsub.f32 %v345_v50, %v348_v51  ;;  %v415_v14 = vld [vmem:[%s692_s4] sm:$0xff] }
  0x21   : > { %557 = vpow2.f32 %v360_v11  ;;  %v406_v47 = vsub.f32 %v402_v33, %v404_v30  ;;  %v407_v48 = vsub.f32 %v403_v34, %v405_v35 }
  0x22   : > { %559 = vpow2.f32 %v362_v12  ;;  %v350_v56 = vsub.f32 %v344_v38, %v347_v41 }
  0x23   : > { %561 = vpow2.f32 %v408_v17 }
  0x24   : > { %563 = vpow2.f32 %v410_v18 }
  0x2a   : > { %v556_v19 = vpop.eup %555 }
  0x2b   : > { %v558_v20 = vpop.eup %557  ;;  %v364_v21 = vadd.f32 1.0, %v556_v19  ;;  %v367_v27 = vmul.f32 -0.5, %v556_v19  ;;  %v370_v42 = vand.u32 2147483647, %v556_v19 }
  0x2c   : > { %v560_v22 = vpop.eup %559  ;;  %v373_v23 = vadd.f32 1.0, %v558_v20  ;;  %v376_v29 = vmul.f32 -0.5, %v558_v20  ;;  %v379_v44 = vand.u32 2147483647, %v558_v20 }
  0x2d   : > { %565 = vlog2.f32 %v364_v21  ;;  %v382_v25 = vadd.f32 1.0, %v560_v22  ;;  %v385_v32 = vmul.f32 -0.5, %v560_v22  ;;  %v368_v40 = vadd.f32 1.0, %v367_v27  ;;  %v562_v45 = vpop.eup %561 }
  0x2e   : > { %567 = vlog2.f32 %v373_v23  ;;  %v377_v43 = vadd.f32 1.0, %v376_v29  ;;  %v564_v49 = vpop.eup %563  ;;  %v388_v52 = vand.u32 2147483647, %v560_v22  ;;  %vm371_vm0 = vcmp.lt.f32.partialorder %v370_v42, 0.0004427343 }
  0x2f   : > { %569 = vlog2.f32 %v382_v25  ;;  %v386_v46 = vadd.f32 1.0, %v385_v32  ;;  %v369_v54 = vmul.f32 %v556_v19, %v368_v40  ;;  %vm380_vm1 = vcmp.lt.f32.partialorder %v379_v44, 0.0004427343 }
  0x30   : > { %v378_v57 = vmul.f32 %v558_v20, %v377_v43  ;;  %v412_v61 = vsub.f32 %v406_v47, %v562_v45  ;;  %v413_v62 = vsub.f32 %v407_v48, %v564_v49  ;;  %vm389_vm2 = vcmp.lt.f32.partialorder %v388_v52, 0.0004427343 }
  0x31   : > { %v387_v60 = vmul.f32 %v560_v22, %v386_v46 }
  0x32   : > { %v414_v8 = vadd.f32 %v413_v62, %v412_v61 }
  0x34   : > { %v417_v12 = vmul.f32 -6.25e-06, %v414_v8 }
  0x37   : > { %v566_v55 = vpop.eup %565 }
  0x38   : > { %v568_v58 = vpop.eup %567  ;;  %v366_v59 = vmul.f32 0.6931472, %v566_v55 }
  0x39   : > { %v570_v63 = vpop.eup %569  ;;  %v375_v1 = vmul.f32 0.6931472, %v568_v58 }
  0x3a   : > { %v372_v2 = vsel %vm371_vm0, %v369_v54, %v366_v59  ;;  %v384_v4 = vmul.f32 0.6931472, %v570_v63 }
  0x3b   : > { %v381_v3 = vsel %vm380_vm1, %v378_v57, %v375_v1  ;;  %v391_v5 = vadd.f32 %v372_v2, %v349_v53 }
  0x3c   : > { %v390_v6 = vsel %vm389_vm2, %v387_v60, %v384_v4  ;;  %v392_v7 = vadd.f32 %v381_v3, %v350_v56 }
  0x3d   : > { %v393_v9 = vadd.f32 %v390_v6, %v351_v0 }
  0x3e   : > { %v394_v10 = vadd.f32 %v392_v7, %v391_v5 }
  0x40   : > { %v395_v11 = vadd.f32 %v394_v10, %v393_v9 }
  0x42   : > { %v416_v13 = vmul.f32 6.25e-05, %v395_v11 }
  0x44   : > { %v418_v15 = vadd.f32 %v417_v12, %v416_v13 }
  0x46   : > { %v419_v16 = vadd.f32 %v418_v15, %v415_v14 }
  0x48   : > { %420 = vst [vmem:[%s692_s4] sm:$0xff] %v419_v16 }
  0x49 PF: > { %s14_s17 = sadd.s32 1, %s593_s17   ;;  %s693_s15 = smov %s589_s16 }
  0x4a   : > { %p11_p7 = scmp.ge.s32.totalorder %s14_s17, 5   ;;  %s694_s16 = smov %s696_s18 }
  0x4c   :  { %13 = sbr.rel (!%p11_p7) target bundleno = 2 (0x2), region = 79 }

</bundles_post_ra>
